<compile_context>
chip_gen: v7x
topology: tpu7x:2x2x1
jax: 0.10.0
libtpu: 0.0.40
codegen_flags: <defaults>
</compile_context>

<pallas_src>
import jax
import jax.numpy as jnp
from jax.experimental import pallas as pl
from jax.experimental.pallas import tpu as pltpu


def _maxpool2x2_kernel(x_ref, o_ref):
    # x_ref block: (orb, 2*w) -- each row = [input row 2j | input row 2j+1] of one channel.
    # o_ref block: (orb, w // 2)
    orb, w2 = x_ref.shape
    w = w2 // 2
    ow = w // 2
    x = x_ref[...]
    # Stage 1: vertical pair max -- elementwise max of two contiguous lane slices (VALU).
    m = jnp.maximum(x[:, :w], x[:, w:])
    # Stage 2: horizontal pair max on the half-size tensor (the only lane-crossing step).
    o_ref[...] = jnp.max(m.reshape(orb, ow, 2), axis=-1)


def _choose_block_rows(total_rows: int, row_bytes: int, itemsize: int,
                       target_bytes: int) -> int:
    """Largest sublane-aligned divisor of total_rows whose input block fits the budget."""
    quantum = max(8, 32 // itemsize)  # sublane tile: f32 -> 8, bf16 -> 16, int8 -> 32
    best = None
    for d in range(quantum, total_rows + 1, quantum):
        if d * row_bytes > target_bytes:
            break
        if total_rows % d == 0:
            best = d
    if best is None:
        # Nothing aligned fits the budget (tiny or awkward shape): smallest aligned
        # divisor, else the full extent (full-dim blocks are always layout-legal).
        for d in range(quantum, total_rows + 1, quantum):
            if total_rows % d == 0:
                best = d
                break
        if best is None:
            best = total_rows
    return best


def unet_downsampling(x: jax.Array, *, target_block_bytes: int = 2 * 1024 * 1024) -> jax.Array:
    """Equivalent of nn.Sequential(nn.MaxPool2d(2)) forward on NCHW input."""
    n, c, h, w = x.shape
    assert h >= 2 and w >= 2, "MaxPool2d(2) needs spatial dims >= 2"
    if (h % 2) or (w % 2):
        # PyTorch floor semantics: drop the trailing row / column.
        x = x[:, :, : h - (h % 2), : w - (w % 2)]
        h, w = h - (h % 2), w - (w % 2)
    oh, ow = h // 2, w // 2
    dtype = x.dtype
    itemsize = jnp.dtype(dtype).itemsize

    out_rows = n * c * oh
    # Free row-major view: one row per vertical pooling pair, both input rows side by side.
    x2 = x.reshape(out_rows, 2 * w)
    row_bytes = 2 * w * itemsize
    orb = _choose_block_rows(out_rows, row_bytes, itemsize, target_block_bytes)
    grid = (out_rows // orb,)

    out2 = pl.pallas_call(
        _maxpool2x2_kernel,
        out_shape=jax.ShapeDtypeStruct((out_rows, ow), dtype),
        grid_spec=pltpu.PrefetchScalarGridSpec(
            num_scalar_prefetch=0,
            grid=grid,
            in_specs=[pl.BlockSpec((orb, 2 * w), lambda i: (i, 0))],
            out_specs=pl.BlockSpec((orb, ow), lambda i: (i, 0)),
        ),
        compiler_params=pltpu.CompilerParams(
            dimension_semantics=("parallel",),
            vmem_limit_bytes=32 * 1024 * 1024,
        ),
        cost_estimate=pl.CostEstimate(
            flops=3 * n * c * oh * ow,  # 3 compare-selects per output element
            transcendentals=0,
            bytes_accessed=(n * c * h * w + n * c * oh * ow) * itemsize,
        ),
    )(x2)
    return out2.reshape(n, c, oh, ow)


if __name__ == "__main__":
    key = jax.random.PRNGKey(0)

    def ref_pool(v):
        return jax.lax.reduce_window(
            v, jnp.array(-jnp.inf, v.dtype), jax.lax.max,
            window_dimensions=(1, 1, 2, 2),
            window_strides=(1, 1, 2, 2),
            padding="VALID",
        )

    # Small functional check (toy shape). Real perf should be validated on UNet stage
    # shapes like (1, 64, 512, 512) and (1, 512, 32, 32); the tiling adapts automatically.
    x = jax.random.normal(key, (2, 4, 16, 16), dtype=jnp.float32)
    out = jax.block_until_ready(unet_downsampling(x))
    assert out.shape == (2, 4, 8, 8)
    assert jnp.array_equal(out, ref_pool(x)), "Pallas maxpool mismatch (f32)"

    # Exercise the multi-block grid path (tiny block budget forces several grid steps).
    out_mb = jax.block_until_ready(unet_downsampling(x, target_block_bytes=4096))
    assert jnp.array_equal(out_mb, ref_pool(x)), "Pallas maxpool mismatch (multi-block)"

    # bf16 stays bf16 end-to-end (max is exact; halves HBM traffic in real models).
    xb = jax.random.normal(key, (2, 4, 16, 16), dtype=jnp.bfloat16)
    outb = jax.block_until_ready(unet_downsampling(xb))
    assert outb.dtype == jnp.bfloat16
    assert jnp.array_equal(outb, ref_pool(xb)), "Pallas maxpool mismatch (bf16)"

    # Odd spatial dims: PyTorch floor semantics (trailing row/col dropped).
    xo = jax.random.normal(key, (1, 3, 9, 10), dtype=jnp.float32)
    outo = jax.block_until_ready(unet_downsampling(xo))
    assert outo.shape == (1, 3, 4, 5)
    assert jnp.array_equal(outo, ref_pool(xo)), "Pallas maxpool mismatch (odd dims)"

    print("KERNEL_OK")
</pallas_src>

<mosaic_0001>
module attributes {stable_mosaic.version = 11 : i64} {
  func.func @_maxpool2x2_kernel(%arg0: i32, %arg1: memref<64x32xf32, #tpu.memory_space<vmem>>, %arg2: memref<64x8xf32, #tpu.memory_space<vmem>>) attributes {dimension_semantics = [#tpu.dimension_semantics<parallel>], iteration_bounds = array<i64: 1>, scalar_prefetch = 0 : i64, scratch_operands = 0 : i64, tpu.core_type = #tpu.core_type<tc>, window_params = [{transform_indices = @transform_0, window_bounds = array<i64: 64, 32>}, {transform_indices = @transform_1, window_bounds = array<i64: 64, 8>}]} {
    %c0 = arith.constant 0 : index
    %c0_0 = arith.constant 0 : index
    %0 = vector.load %arg1[%c0, %c0_0] : memref<64x32xf32, #tpu.memory_space<vmem>>, vector<64x32xf32>
    %1 = vector.extract_strided_slice %0 {offsets = [0, 0], sizes = [64, 16], strides = [1, 1]} : vector<64x32xf32> to vector<64x16xf32>
    %2 = vector.extract_strided_slice %0 {offsets = [0, 16], sizes = [64, 16], strides = [1, 1]} : vector<64x32xf32> to vector<64x16xf32>
    %3 = arith.maximumf %1, %2 : vector<64x16xf32>
    %4 = vector.shape_cast %3 : vector<64x16xf32> to vector<64x8x2xf32>
    %cst = arith.constant dense<0xFF800000> : vector<64x8xf32>
    %5 = vector.multi_reduction <maximumf>, %4, %cst [2] : vector<64x8x2xf32> to vector<64x8xf32>
    %c0_1 = arith.constant 0 : index
    %c0_2 = arith.constant 0 : index
    %6 = vector.load %arg2[%c0_1, %c0_2] : memref<64x8xf32, #tpu.memory_space<vmem>>, vector<64x8xf32>
    tpu.vector_store %arg2[%c0_1, %c0_2], %5 {strides = array<i32>} : memref<64x8xf32, #tpu.memory_space<vmem>>, vector<64x8xf32>,
    return
  }
  func.func @transform_0(%arg0: i32) -> (i32, i32) {
    %c0_i32 = arith.constant 0 : i32
    %c0_i32_0 = arith.constant 0 : i32
    return %arg0, %c0_i32 : i32, i32
  }
  func.func @transform_1(%arg0: i32) -> (i32, i32) {
    %c0_i32 = arith.constant 0 : i32
    %c0_i32_0 = arith.constant 0 : i32
    return %arg0, %c0_i32 : i32, i32
  }
}

</mosaic_0001>

<bundles_post_ra>
// kernel: tpu_custom_call.1
= control target key start
LH: loop header
LB: loop body
LE: loop exit
PB: predicated region body
PF: predicated region fallthrough
CT: control target
= control target key end

     0   :  { %s1929_s10 = smov 112   ;;  %s1930_s23 = smov 126   ;;  %v1937_v51 = vmov 1983009808   ;;  %v3161_v53 = vlaneseq  ;;  %v1938_v56 = vmov 1934713408   ;;  %s3159_s0 = inlined_call_operand.vmem [shape: f32[64,32], index: 0, kind: input, shape index: {}]   ;;  %s3160_s1 = inlined_call_operand.vmem [shape: f32[64,8], index: 1, kind: output, shape index: {}]  }
   0x1   :  { %v8_v0 = vld [vmem:[%s3159_s0] sm:$0xff]  ;;  %v10_v1 = vld [vmem:[%s3159_s0 + $0x10] sm:$0xff]  ;;  %v9_v2 = vld [vmem:[%s3159_s0 + $0x8] sm:$0xff]  ;;  %s1932_s24 = smov 122   ;;  %s1933_s25 = smov 120   ;;  %v235_v52 = vunpack.c.l.s4 %v1937_v51  ;;  %v299_v57 = vunpack.c.l.s4 %v1938_v56  ;;  %vm1320_vm0 = vcmask 15360  }
   0x2   :  { %24 = vrot.lane.b32.xlu0 %v8_v0, %s1929_s10  ;;  %28 = vrot.lane.b32.xlu1 %v10_v1, %s1929_s10  ;;  %v11_v3 = vld [vmem:[%s3159_s0 + $0x18] sm:$0xff]  ;;  %v12_v4 = vld [vmem:[%s3159_s0 + $0x20] sm:$0xff]  ;;  %s1934_s26 = smov 118   ;;  %s1935_s27 = smov 116   ;;  %v2096_v59 = vshrl.u32 %v3161_v53, 7  ;;  %vm1835_vm1 = vcmask 1041409  }
   0x3   :  { %v13_v5 = vld [vmem:[%s3159_s0 + $0x28] sm:$0xff]  ;;  %v14_v6 = vld [vmem:[%s3159_s0 + $0x30] sm:$0xff]  ;;  %v15_v7 = vld [vmem:[%s3159_s0 + $0x38] sm:$0xff]  ;;  %s1931_s0 = smov 124   ;;  %s1936_s28 = smov 114   ;;  %v236_v58 = vunpack.c.0.s8 %v235_v52  ;;  %v300_v62 = vunpack.c.0.s8 %v299_v57  ;;  %vm1837_vm2 = vcmask 1042434  }
   0x4   :  { %3186 = vst [vmem:[#allocation2_spill] sm:$0xff] %v2096_v59  ;;  %vm1839_vm3 = vcmask 1043459   ;;  %vm1841_vm4 = vcmask 1044484   ;;  %vm1843_vm5 = vcmask 1045509   ;;  %vm1845_vm6 = vcmask 1046534  }
   0x5   :  { %v2103_v63 = vsub.s32 %v236_v58, %v2096_v59  ;;  %vm1847_vm7 = vcmask 1047559   ;;  %vm1906_vm8 = vcmask 64512  }
   0x6   :  { %26 = vrot.lane.b32.xlu0 %v9_v2, %s1929_s10  ;;  %30 = vrot.lane.b32.xlu1 %v11_v3, %s1929_s10 }
   0xa   :  { %32 = vrot.lane.b32.xlu0 %v12_v4, %s1929_s10  ;;  %34 = vrot.lane.b32.xlu1 %v13_v5, %s1929_s10 }
   0xe   :  { %36 = vrot.lane.b32.xlu0 %v14_v6, %s1929_s10  ;;  %38 = vrot.lane.b32.xlu1 %v15_v7, %s1929_s10 }
  0x74   :  { %v25_v8 = vpop.permute.xlu0 %24  ;;  %v29_v9 = vpop.permute.xlu1 %28 }
  0x75   :  { %v1973_v10 = vmax.f32 %v8_v0, %v25_v8  ;;  %v1976_v11 = vmax.f32 %v10_v1, %v29_v9  ;;  %v2117_v9 = vsub.s32 %v300_v62, %v2096_v59 }
  0x77   :  { %64 = vrot.lane.b32.xlu0 %v1973_v10, %s1930_s23 }
  0x78   :  { %v27_v12 = vpop.permute.xlu0 %26  ;;  %v31_v13 = vpop.permute.xlu1 %30 }
  0x79   :  { %v1978_v14 = vmax.f32 %v9_v2, %v27_v12  ;;  %v1982_v15 = vmax.f32 %v11_v3, %v31_v13 }
  0x7b   :  { %68 = vrot.lane.b32.xlu0 %v1976_v11, %s1930_s23  ;;  %66 = vrot.lane.b32.xlu1 %v1978_v14, %s1930_s23 }
  0x7c   :  { %v33_v16 = vpop.permute.xlu0 %32  ;;  %v35_v17 = vpop.permute.xlu1 %34 }
  0x7d   :  { %v1984_v18 = vmax.f32 %v12_v4, %v33_v16  ;;  %v1988_v19 = vmax.f32 %v13_v5, %v35_v17 }
  0x7f   :  { %70 = vrot.lane.b32.xlu1 %v1982_v15, %s1930_s23  ;;  %72 = vrot.lane.b32.xlu0 %v1984_v18, %s1930_s23 }
  0x80   :  { %v37_v20 = vpop.permute.xlu0 %36  ;;  %v39_v21 = vpop.permute.xlu1 %38 }
  0x81   :  { %v1990_v22 = vmax.f32 %v14_v6, %v37_v20  ;;  %v1994_v23 = vmax.f32 %v15_v7, %v39_v21 }
  0x83   :  { %74 = vrot.lane.b32.xlu1 %v1988_v19, %s1930_s23  ;;  %76 = vrot.lane.b32.xlu0 %v1990_v22, %s1930_s23 }
  0x87   :  { %78 = vrot.lane.b32.xlu1 %v1994_v23, %s1930_s23  ;;  %88 = vrot.lane.b32.xlu0 %v1973_v10, %s1931_s0 }
  0x8b   :  { %90 = vrot.lane.b32.xlu1 %v1978_v14, %s1931_s0  ;;  %92 = vrot.lane.b32.xlu0 %v1976_v11, %s1931_s0 }
  0x8f   :  { %94 = vrot.lane.b32.xlu1 %v1982_v15, %s1931_s0  ;;  %96 = vrot.lane.b32.xlu0 %v1984_v18, %s1931_s0 }
  0x93   :  { %98 = vrot.lane.b32.xlu1 %v1988_v19, %s1931_s0  ;;  %100 = vrot.lane.b32.xlu0 %v1990_v22, %s1931_s0 }
  0x97   :  { %102 = vrot.lane.b32.xlu1 %v1994_v23, %s1931_s0  ;;  %112 = vrot.lane.b32.xlu0 %v1973_v10, %s1932_s24 }
  0x9b   :  { %114 = vrot.lane.b32.xlu1 %v1978_v14, %s1932_s24  ;;  %116 = vrot.lane.b32.xlu0 %v1976_v11, %s1932_s24 }
  0x9f   :  { %118 = vrot.lane.b32.xlu1 %v1982_v15, %s1932_s24  ;;  %120 = vrot.lane.b32.xlu0 %v1984_v18, %s1932_s24 }
  0xa3   :  { %122 = vrot.lane.b32.xlu1 %v1988_v19, %s1932_s24  ;;  %124 = vrot.lane.b32.xlu0 %v1990_v22, %s1932_s24 }
  0xa7   :  { %126 = vrot.lane.b32.xlu1 %v1994_v23, %s1932_s24  ;;  %136 = vrot.lane.b32.xlu0 %v1973_v10, %s1933_s25 }
  0xab   :  { %138 = vrot.lane.b32.xlu1 %v1978_v14, %s1933_s25  ;;  %140 = vrot.lane.b32.xlu0 %v1976_v11, %s1933_s25 }
  0xaf   :  { %142 = vrot.lane.b32.xlu1 %v1982_v15, %s1933_s25  ;;  %144 = vrot.lane.b32.xlu0 %v1984_v18, %s1933_s25 }
  0xb3   :  { %146 = vrot.lane.b32.xlu1 %v1988_v19, %s1933_s25  ;;  %148 = vrot.lane.b32.xlu0 %v1990_v22, %s1933_s25 }
  0xb7   :  { %150 = vrot.lane.b32.xlu1 %v1994_v23, %s1933_s25  ;;  %160 = vrot.lane.b32.xlu0 %v1973_v10, %s1934_s26 }
  0xbb   :  { %162 = vrot.lane.b32.xlu1 %v1978_v14, %s1934_s26  ;;  %164 = vrot.lane.b32.xlu0 %v1976_v11, %s1934_s26 }
  0xbf   :  { %166 = vrot.lane.b32.xlu1 %v1982_v15, %s1934_s26  ;;  %168 = vrot.lane.b32.xlu0 %v1984_v18, %s1934_s26 }
  0xc3   :  { %170 = vrot.lane.b32.xlu1 %v1988_v19, %s1934_s26  ;;  %172 = vrot.lane.b32.xlu0 %v1990_v22, %s1934_s26 }
  0xc7   :  { %174 = vrot.lane.b32.xlu1 %v1994_v23, %s1934_s26  ;;  %184 = vrot.lane.b32.xlu0 %v1973_v10, %s1935_s27 }
  0xcb   :  { %186 = vrot.lane.b32.xlu1 %v1978_v14, %s1935_s27  ;;  %188 = vrot.lane.b32.xlu0 %v1976_v11, %s1935_s27 }
  0xcf   :  { %190 = vrot.lane.b32.xlu1 %v1982_v15, %s1935_s27  ;;  %192 = vrot.lane.b32.xlu0 %v1984_v18, %s1935_s27 }
  0xd3   :  { %194 = vrot.lane.b32.xlu1 %v1988_v19, %s1935_s27  ;;  %196 = vrot.lane.b32.xlu0 %v1990_v22, %s1935_s27 }
  0xd7   :  { %198 = vrot.lane.b32.xlu1 %v1994_v23, %s1935_s27  ;;  %208 = vrot.lane.b32.xlu0 %v1973_v10, %s1936_s28 }
  0xdb   :  { %210 = vrot.lane.b32.xlu1 %v1978_v14, %s1936_s28  ;;  %212 = vrot.lane.b32.xlu0 %v1976_v11, %s1936_s28 }
  0xdf   :  { %214 = vrot.lane.b32.xlu1 %v1982_v15, %s1936_s28  ;;  %216 = vrot.lane.b32.xlu0 %v1984_v18, %s1936_s28 }
  0xe3   :  { %218 = vrot.lane.b32.xlu1 %v1988_v19, %s1936_s28  ;;  %220 = vrot.lane.b32.xlu0 %v1990_v22, %s1936_s28 }
  0xe7   :  { %222 = vrot.lane.b32.xlu1 %v1994_v23, %s1936_s28 }
  0xe9   :  { %v2045_v24 = vpop.permute.xlu0 %64 }
  0xed   :  { %v2047_v25 = vpop.permute.xlu1 %66  ;;  %v2049_v26 = vpop.permute.xlu0 %68 }
  0xf1   :  { %v2051_v27 = vpop.permute.xlu1 %70  ;;  %v2053_v28 = vpop.permute.xlu0 %72 }
  0xf5   :  { %v2055_v29 = vpop.permute.xlu1 %74  ;;  %v2057_v30 = vpop.permute.xlu0 %76 }
  0xf9   :  { %v2059_v31 = vpop.permute.xlu1 %78  ;;  %v89_v32 = vpop.permute.xlu0 %88 }
  0xfa   :  { %v232_v0 = vcombine.low %v1973_v10, %v89_v32  ;;  %v233_v1 = vcombine.high %v1973_v10, %v89_v32 }
  0xfc   :  { %v240_v12 = vrot.slane %v232_v0, %v2103_v63  ;;  %v2121_v10 = vrot.slane %v233_v1, %v2103_v63 }
  0xfd   :  { %v91_v33 = vpop.permute.xlu1 %90  ;;  %v93_v34 = vpop.permute.xlu0 %92 }
  0xfe   :  { %v368_v2 = vcombine.low %v1978_v14, %v91_v33  ;;  %v369_v3 = vcombine.high %v1978_v14, %v91_v33  ;;  %v504_v4 = vcombine.low %v1976_v11, %v93_v34  ;;  %v505_v5 = vcombine.high %v1976_v11, %v93_v34 }
 0x100   :  { %v2124_v13 = vrot.slane %v368_v2, %v2103_v63  ;;  %v2128_v11 = vrot.slane %v369_v3, %v2103_v63  ;;  %v2137_v21 = vrot.slane %v504_v4, %v2103_v63  ;;  %v2140_v32 = vrot.slane %v505_v5, %v2103_v63 }
 0x101   :  { %v2061_v35 = vpop.permute.xlu1 %94  ;;  %v2063_v36 = vpop.permute.xlu0 %96 }
 0x102   :  { %v640_v16 = vcombine.low %v1982_v15, %v2061_v35  ;;  %v641_v17 = vcombine.high %v1982_v15, %v2061_v35  ;;  %v776_v20 = vcombine.low %v1984_v18, %v2063_v36 }
 0x104   :  { %v2165_v58 = vrot.slane %v640_v16, %v2103_v63 }
 0x105   :  { %v2065_v37 = vpop.permute.xlu1 %98  ;;  %v2067_v38 = vpop.permute.xlu0 %100 }
 0x106   :  { %v912_v15 = vcombine.low %v1988_v19, %v2065_v37  ;;  %v913_v35 = vcombine.high %v1988_v19, %v2065_v37  ;;  %v1048_v51 = vcombine.low %v1990_v22, %v2067_v38  ;;  %v2168_v19 = vrot.slane %v641_v17, %v2103_v63 }
 0x107   :  { %v2171_v37 = vrot.slane %v776_v20, %v2103_v63 }
 0x108   :  { %v2187_v2 = vrot.slane %v912_v15, %v2103_v63  ;;  %v2190_v3 = vrot.slane %v913_v35, %v2103_v63 }
 0x109   :  { %v2069_v39 = vpop.permute.xlu1 %102  ;;  %v113_v40 = vpop.permute.xlu0 %112  ;;  %3187 = vst [vmem:[#allocation3_spill] sm:$0xff] %v2171_v37 }
 0x10a   :  { %v248_v6 = vcombine.low %v2045_v24, %v113_v40  ;;  %v249_v14 = vcombine.high %v2045_v24, %v113_v40  ;;  %v777_v24 = vcombine.high %v1984_v18, %v2063_v36  ;;  %v1049_v18 = vcombine.high %v1990_v22, %v2067_v38 }
 0x10b   :  { %v1184_v36 = vcombine.low %v1994_v23, %v2069_v39  ;;  %v1185_v22 = vcombine.high %v1994_v23, %v2069_v39  ;;  %v2193_v23 = vrot.slane %v1048_v51, %v2103_v63 }
 0x10c   :  { %v256_v33 = vrot.slane %v248_v6, %v2103_v63  ;;  %v263_v56 = vrot.slane %v249_v14, %v2103_v63  ;;  %v2176_v38 = vrot.slane %v777_v24, %v2103_v63  ;;  %v2197_v4 = vrot.slane %v1049_v18, %v2103_v63 }
 0x10d   :  { %v2071_v41 = vpop.permute.xlu1 %114  ;;  %v2073_v42 = vpop.permute.xlu0 %116  ;;  %v2205_v6 = vrot.slane %v1185_v22, %v2103_v63 }
 0x10e   :  { %v384_v52 = vcombine.low %v2047_v25, %v2071_v41  ;;  %v385_v57 = vcombine.high %v2047_v25, %v2071_v41  ;;  %3188 = vst [vmem:[#allocation4_spill] sm:$0xff] %v2176_v38  ;;  %v520_v62 = vcombine.low %v2049_v26, %v2073_v42  ;;  %v521_v25 = vcombine.high %v2049_v26, %v2073_v42 }
 0x10f   :  { %v296_v1 = vcombine.low %v240_v12, %v256_v33  ;;  %v2200_v26 = vrot.slane %v1184_v36, %v2103_v63  ;;  %v312_v5 = vcombine.low %v2121_v10, %v263_v56  ;;  %v297_v16 = vcombine.high %v240_v12, %v256_v33 }
 0x110   :  { %v392_v39 = vrot.slane %v384_v52, %v2103_v63  ;;  %v399_v42 = vrot.slane %v385_v57, %v2103_v63  ;;  %v313_v17 = vcombine.high %v2121_v10, %v263_v56  ;;  %v2211_v20 = vrot.slane %v520_v62, %v2103_v63 }
 0x111   :  { %v2075_v43 = vpop.permute.xlu1 %118  ;;  %v2077_v44 = vpop.permute.xlu0 %120  ;;  %v2214_v24 = vrot.slane %v521_v25, %v2103_v63  ;;  %v2223_v52 = vrot.slane %v296_v1, %v2117_v9  ;;  %v2234_v56 = vrot.slane %v312_v5, %v2117_v9 }
 0x112   :  { %v657_v14 = vcombine.high %v2051_v27, %v2075_v43  ;;  %v792_v15 = vcombine.low %v2053_v28, %v2077_v44  ;;  %v656_v12 = vcombine.low %v2051_v27, %v2075_v43  ;;  %v793_v10 = vcombine.high %v2053_v28, %v2077_v44 }
 0x113   :  { %v432_v33 = vcombine.low %v2124_v13, %v392_v39  ;;  %v433_v18 = vcombine.high %v2124_v13, %v392_v39  ;;  %v448_v57 = vcombine.low %v2128_v11, %v399_v42  ;;  %v449_v22 = vcombine.high %v2128_v11, %v399_v42 }
 0x114   :  { %v2239_v62 = vrot.slane %v657_v14, %v2103_v63  ;;  %v2246_v43 = vrot.slane %v297_v16, %v2117_v9  ;;  %v2249_v44 = vrot.slane %v792_v15, %v2103_v63  ;;  %v2264_v39 = vrot.slane %v793_v10, %v2103_v63 }
 0x115   :  { %v2079_v45 = vpop.permute.xlu1 %122  ;;  %v2081_v46 = vpop.permute.xlu0 %124  ;;  %v2267_v42 = vrot.slane %v432_v33, %v2117_v9  ;;  %v2274_v5 = vrot.slane %v448_v57, %v2117_v9  ;;  %v2277_v14 = vrot.slane %v449_v22, %v2117_v9  ;;  %v568_v16 = vcombine.low %v2137_v21, %v2211_v20 }
 0x116   :  { %v928_v36 = vcombine.low %v2055_v29, %v2079_v45  ;;  %v929_v27 = vcombine.high %v2055_v29, %v2079_v45  ;;  %v1064_v28 = vcombine.low %v2057_v30, %v2081_v46  ;;  %3189 = vst [vmem:[#allocation5_spill] sm:$0xff] %v2249_v44  ;;  %v1065_v13 = vcombine.high %v2057_v30, %v2081_v46 }
 0x117   :  { %v2260_v29 = vrot.slane %v313_v17, %v2117_v9  ;;  %v664_v45 = vrot.slane %v656_v12, %v2103_v63  ;;  %3190 = vst [vmem:[#allocation6_spill] sm:$0xff] %v2264_v39  ;;  %v2270_v30 = vrot.slane %v433_v18, %v2117_v9  ;;  %3192 = vst [vmem:[#allocation8_spill] sm:$0xff] %v2274_v5 }
 0x118   :  { %v936_v46 = vrot.slane %v928_v36, %v2103_v63  ;;  %3193 = vst [vmem:[#allocation9_spill] sm:$0xff] %v2277_v14  ;;  %v720_v17 = vcombine.low %v2168_v19, %v2239_v62  ;;  %v2284_v15 = vrot.slane %v929_v27, %v2103_v63  ;;  %v1072_v12 = vrot.slane %v1064_v28, %v2103_v63 }
 0x119   :  { %v2083_v47 = vpop.permute.xlu1 %126  ;;  %v2085_v48 = vpop.permute.xlu0 %136  ;;  %3191 = vst [vmem:[#allocation7_spill] sm:$0xff] %v2270_v30  ;;  %v841_v18 = vcombine.high %v2171_v37, %v2249_v44  ;;  %v2294_v36 = vrot.slane %v1065_v13, %v2103_v63  ;;  %v856_v28 = vcombine.low %v2176_v38, %v2264_v39  ;;  %v584_v53 = vcombine.low %v2140_v32, %v2214_v24 }
 0x11a   :  { %v1200_v11 = vcombine.low %v2059_v31, %v2083_v47  ;;  %3194 = vst [vmem:[#allocation10_spill] sm:$0xff] %v2284_v15  ;;  %v1201_v10 = vcombine.high %v2059_v31, %v2083_v47  ;;  %v569_v47 = vcombine.high %v2137_v21, %v2211_v20  ;;  %v976_v13 = vcombine.low %v2187_v2, %v936_v46 }
 0x11b   :  { %v2312_v33 = vrot.slane %v568_v16, %v2117_v9  ;;  %v585_v59 = vcombine.high %v2140_v32, %v2214_v24  ;;  %v992_v14 = vcombine.low %v2190_v3, %v2284_v15  ;;  %v1113_v21 = vcombine.high %v2193_v23, %v1072_v12 }
 0x11c   :  { %v1208_v57 = vrot.slane %v1200_v11, %v2103_v63  ;;  %v977_v11 = vcombine.high %v2187_v2, %v936_v46  ;;  %v2322_v20 = vrot.slane %v1201_v10, %v2103_v63  ;;  %v1128_v2 = vcombine.low %v2197_v4, %v2294_v36 }
 0x11d   :  { %v2087_v49 = vpop.permute.xlu1 %138  ;;  %v2089_v50 = vpop.permute.xlu0 %140  ;;  %3195 = vst [vmem:[#allocation11_spill] sm:$0xff] %v2312_v33  ;;  %v704_v32 = vcombine.low %v2165_v58, %v664_v45  ;;  %v1112_v24 = vcombine.low %v2193_v23, %v1072_v12  ;;  %v2338_v39 = vrot.slane %v569_v47, %v2117_v9  ;;  %v2341_v38 = vrot.slane %v584_v53, %v2117_v9 }
 0x11e   :  { %v1248_v46 = vcombine.low %v2200_v26, %v1208_v57  ;;  %v1249_v5 = vcombine.high %v2200_v26, %v1208_v57  ;;  %v2344_v15 = vrot.slane %v585_v59, %v2117_v9  ;;  %v705_v23 = vcombine.high %v2165_v58, %v664_v45 }
 0x11f   :  { %3196 = vst [vmem:[#allocation12_spill] sm:$0xff] %v2341_v38  ;;  %v1264_v12 = vcombine.low %v2205_v6, %v2322_v20  ;;  %v2354_v47 = vrot.slane %v976_v13, %v2117_v9  ;;  %v2357_v38 = vrot.slane %v704_v32, %v2117_v9  ;;  %v2360_v59 = vrot.slane %v1112_v24, %v2117_v9 }
 0x120   :  { %v2363_v58 = vrot.slane %v1248_v46, %v2117_v9  ;;  %v2366_v45 = vrot.slane %v977_v11, %v2117_v9  ;;  %v2371_v13 = vrot.slane %v841_v18, %v2117_v9  ;;  %v2374_v44 = vrot.slane %v1249_v5, %v2117_v9 }
 0x121   :  { %v2091_v54 = vpop.permute.xlu1 %142  ;;  %v2093_v55 = vpop.permute.xlu0 %144  ;;  %v2381_v24 = vrot.slane %v705_v23, %v2117_v9  ;;  %v2384_v11 = vrot.slane %v1113_v21, %v2117_v9  ;;  %v2389_v18 = vrot.slane %v720_v17, %v2117_v9  ;;  %v2392_v5 = vrot.slane %v992_v14, %v2117_v9 }
 0x122   :  { %3197 = vst [vmem:[#allocation13_spill] sm:$0xff] %v2366_v45  ;;  %3198 = vst [vmem:[#allocation14_spill] sm:$0xff] %v2371_v13  ;;  %v2403_v13 = vrot.slane %v1264_v12, %v2117_v9 }
 0x123   :  { %3199 = vst [vmem:[#allocation15_spill] sm:$0xff] %v2374_v44  ;;  %3200 = vst [vmem:[#allocation16_spill] sm:$0xff] %v2384_v11  ;;  %v2395_v44 = vrot.slane %v856_v28, %v2117_v9 }
 0x124   :  { %3201 = vst [vmem:[#allocation17_spill] sm:$0xff] %v2389_v18  ;;  %3202 = vst [vmem:[#allocation18_spill] sm:$0xff] %v2392_v5 }
 0x125   :  { %v2098_v60 = vpop.permute.xlu1 %146  ;;  %v2100_v61 = vpop.permute.xlu0 %148  ;;  %3203 = vst [vmem:[#allocation19_spill] sm:$0xff] %v2395_v44  ;;  %3204 = vst [vmem:[#allocation20_spill] sm:$0xff] %v2403_v13 }
 0x129   :  { %v2112_v7 = vpop.permute.xlu1 %150  ;;  %v2114_v8 = vpop.permute.xlu0 %160 }
 0x12d   :  { %v2145_v34 = vpop.permute.xlu1 %162  ;;  %v2147_v40 = vpop.permute.xlu0 %164 }
 0x131   :  { %v2182_v41 = vpop.permute.xlu1 %166  ;;  %v2184_v0 = vpop.permute.xlu0 %168 }
 0x135   :  { %v2218_v35 = vpop.permute.xlu1 %170  ;;  %v2220_v51 = vpop.permute.xlu0 %172 }
 0x139   :  { %v2255_v25 = vpop.permute.xlu1 %174  ;;  %v2257_v1 = vpop.permute.xlu0 %184 }
 0x13a   :  { %v264_v32 = vcombine.low %v2085_v48, %v2257_v1  ;;  %v265_v46 = vcombine.high %v2085_v48, %v2257_v1 }
 0x13d   :  { %v2297_v22 = vpop.permute.xlu1 %186  ;;  %v2299_v27 = vpop.permute.xlu0 %188 }
 0x13e   :  { %v400_v37 = vcombine.low %v2087_v49, %v2297_v22  ;;  %v401_v48 = vcombine.high %v2087_v49, %v2297_v22  ;;  %v537_v1 = vcombine.high %v2089_v50, %v2299_v27  ;;  %v272_v49 = vrot.slane %v264_v32, %v2103_v63 }
 0x13f   :  { %v279_v22 = vrot.slane %v265_v46, %v2103_v63 }
 0x140   :  { %v2417_v12 = vrot.slane %v400_v37, %v2103_v63  ;;  %v2426_v32 = vrot.slane %v537_v1, %v2103_v63 }
 0x141   :  { %v2327_v16 = vpop.permute.xlu1 %190  ;;  %v193_v33 = vpop.permute.xlu0 %192 }
 0x142   :  { %v673_v10 = vcombine.high %v2091_v54, %v2327_v16  ;;  %v809_v30 = vcombine.high %v2093_v55, %v193_v33  ;;  %v808_v21 = vcombine.low %v2093_v55, %v193_v33  ;;  %v2414_v33 = vrot.slane %v1128_v2, %v2117_v9 }
 0x144   :  { %3205 = vst [vmem:[#allocation21_spill] sm:$0xff] %v2414_v33  ;;  %v2429_v46 = vrot.slane %v673_v10, %v2103_v63  ;;  %v2433_v55 = vrot.slane %v808_v21, %v2103_v63 }
 0x145   :  { %v195_v31 = vpop.permute.xlu1 %194  ;;  %v197_v53 = vpop.permute.xlu0 %196 }
 0x146   :  { %v945_v26 = vcombine.high %v2098_v60, %v195_v31  ;;  %v1081_v57 = vcombine.high %v2100_v61, %v197_v53  ;;  %v944_v17 = vcombine.low %v2098_v60, %v195_v31  ;;  %v1080_v60 = vcombine.low %v2100_v61, %v197_v53 }
 0x147   :  { %v2436_v61 = vrot.slane %v809_v30, %v2103_v63 }
 0x148   :  { %v2447_v21 = vrot.slane %v1080_v60, %v2103_v63 }
 0x149   :  { %v199_v23 = vpop.permute.xlu1 %198  ;;  %v209_v11 = vpop.permute.xlu0 %208  ;;  %3206 = vst [vmem:[#allocation22_spill] sm:$0xff] %v2436_v61 }
 0x14a   :  { %v1217_v14 = vcombine.high %v2112_v7, %v199_v23  ;;  %v280_v28 = vcombine.low %v2114_v8, %v209_v11  ;;  %v281_v44 = vcombine.high %v2114_v8, %v209_v11  ;;  %v2423_v8 = vrot.slane %v401_v48, %v2103_v63 }
 0x14b   :  { %v1216_v2 = vcombine.low %v2112_v7, %v199_v23  ;;  %v2444_v7 = vrot.slane %v945_v26, %v2103_v63 }
 0x14c   :  { %v288_v31 = vrot.slane %v280_v28, %v2103_v63  ;;  %v295_v13 = vrot.slane %v281_v44, %v2103_v63  ;;  %v2439_v44 = vrot.slane %v944_v17, %v2103_v63  ;;  %v2451_v17 = vrot.slane %v1081_v57, %v2103_v63 }
 0x14d   :  { %v211_v11 = vpop.permute.xlu1 %210  ;;  %v213_v37 = vpop.permute.xlu0 %212  ;;  %v2454_v33 = vrot.slane %v1216_v2, %v2103_v63 }
 0x14e   :  { %v328_v53 = vcombine.low %v272_v49, %v288_v31  ;;  %v329_v48 = vcombine.high %v272_v49, %v288_v31  ;;  %v344_v1 = vcombine.low %v279_v22, %v295_v13  ;;  %v416_v10 = vcombine.low %v2145_v34, %v211_v11 }
 0x14f   :  { %v553_v28 = vcombine.high %v2147_v40, %v213_v37  ;;  %v345_v23 = vcombine.high %v279_v22, %v295_v13  ;;  %v417_v30 = vcombine.high %v2145_v34, %v211_v11  ;;  %v552_v49 = vcombine.low %v2147_v40, %v213_v37 }
 0x150   :  { %v336_v57 = vrot.slane %v328_v53, %v2117_v9  ;;  %v2468_v22 = vrot.slane %v1217_v14, %v2103_v63  ;;  %v2471_v40 = vrot.slane %v416_v10, %v2103_v63  ;;  %v2474_v2 = vrot.slane %v344_v1, %v2117_v9 }
 0x151   :  { %v2458_v31 = vrot.slane %v553_v28, %v2103_v63  ;;  %v2460_v5 = vpop.permute.xlu1 %214  ;;  %v217_v26 = vpop.permute.xlu0 %216  ;;  %v2477_v11 = vrot.slane %v329_v48, %v2117_v9  ;;  %v2480_v37 = vrot.slane %v417_v30, %v2103_v63  ;;  %v2487_v14 = vrot.slane %v345_v23, %v2117_v9 }
 0x152   :  { %v689_v60 = vcombine.high %v2182_v41, %v2460_v5  ;;  %v824_v13 = vcombine.low %v2184_v0, %v217_v26  ;;  %v825_v34 = vcombine.high %v2184_v0, %v217_v26  ;;  %v2490_v10 = vrot.slane %v552_v49, %v2103_v63 }
 0x153   :  { %v361_v23 = vcombine.high %v2223_v52, %v336_v57  ;;  %v360_v0 = vcombine.low %v2223_v52, %v336_v57  ;;  %v464_v49 = vcombine.low %v2417_v12, %v2471_v40  ;;  %v480_v57 = vcombine.low %v2423_v8, %v2480_v37 }
 0x154   :  { %v2493_v1 = vrot.slane %v689_v60, %v2103_v63  ;;  %v2496_v48 = vrot.slane %v824_v13, %v2103_v63  ;;  %v2499_v28 = vrot.slane %v825_v34, %v2103_v63  ;;  %v465_v60 = vcombine.high %v2417_v12, %v2471_v40 }
 0x155   :  { %v219_v30 = vpop.permute.xlu1 %218  ;;  %v221_v18 = vpop.permute.xlu0 %220  ;;  %v1324_v34 = vsel %vm1320_vm0, %v361_v23, -inf  ;;  %v1321_v13 = vsel %vm1320_vm0, %v360_v0, -inf  ;;  %v364_v23 = vcombine.low %v2234_v56, %v2474_v2  ;;  %v362_v0 = vcombine.low %v2246_v43, %v2477_v11 }
 0x156   :  { %3207 = vst [vmem:[#allocation23_spill] sm:$0xff] %v2499_v28  ;;  %v960_v26 = vcombine.low %v2218_v35, %v219_v30  ;;  %v961_v53 = vcombine.high %v2218_v35, %v219_v30  ;;  %1325 = vmax.xlane.f32.xlu1 %v1324_v34  ;;  %1322 = vmax.xlane.f32.xlu0 %v1321_v13 }
 0x157   :  { %v1096_v30 = vcombine.low %v2220_v51, %v221_v18  ;;  %v1097_v52 = vcombine.high %v2220_v51, %v221_v18 }
 0x158   :  { %v2522_v12 = vrot.slane %v960_v26, %v2103_v63  ;;  %v2525_v40 = vrot.slane %v961_v53, %v2103_v63  ;;  %v688_v26 = vcombine.low %v2182_v41, %v2460_v5  ;;  %v479_v5 = vrot.slane %v465_v60, %v2117_v9 }
 0x159   :  { %v223_v35 = vpop.permute.xlu1 %222  ;;  %v2541_v13 = vrot.slane %v1096_v30, %v2103_v63  ;;  %v2544_v34 = vrot.slane %v1097_v52, %v2103_v63  ;;  %v366_v30 = vcombine.low %v2260_v29, %v2487_v14  ;;  %v1333_v52 = vsel %vm1320_vm0, %v364_v23, -inf }
 0x15a   :  { %v1232_v45 = vcombine.low %v2255_v25, %v223_v35  ;;  %v1233_v51 = vcombine.high %v2255_v25, %v223_v35  ;;  %v3208_v25 = vcombine.low %v2089_v50, %v2299_v27  ;;  %1334 = vmax.xlane.f32.xlu1 %v1333_v52  ;;  %v472_v35 = vrot.slane %v464_v49, %v2117_v9 }
 0x15b   :  { %v3209_v50 = vcombine.high %v2168_v19, %v2239_v62  ;;  %v488_v19 = vrot.slane %v480_v57, %v2117_v9  ;;  %v696_v57 = vrot.slane %v688_v26, %v2103_v63 }
 0x15c   :  { %v2548_v18 = vrot.slane %v1232_v45, %v2103_v63  ;;  %v2567_v53 = vrot.slane %v1233_v51, %v2103_v63  ;;  %v544_v61 = vrot.slane %v3208_v25, %v2103_v63  ;;  %v1327_v45 = vsel %vm1320_vm0, %v362_v0, -inf }
 0x15d   :  { %v363_v51 = vcombine.high %v2246_v43, %v2477_v11  ;;  %1328 = vmax.xlane.f32.xlu0 %v1327_v45  ;;  %v2592_v27 = vrot.slane %v3209_v50, %v2117_v9  ;;  %v672_v43 = vcombine.low %v2091_v54, %v2327_v16  ;;  %v481_v11 = vcombine.high %v2423_v8, %v2480_v37  ;;  %v3210_v16 = vld [vmem:[#allocation10_spill] sm:$0xff] }
 0x15e   :  { %v1296_v28 = vcombine.low %v2468_v22, %v2567_v53  ;;  %v600_v41 = vcombine.low %v544_v61, %v2490_v10  ;;  %v601_v49 = vcombine.high %v544_v61, %v2490_v10  ;;  %v1339_v0 = vsel %vm1320_vm0, %v366_v30, -inf  ;;  %v3212_v61 = vld [vmem:[#allocation4_spill] sm:$0xff]  ;;  %v3213_v10 = vld [vmem:[#allocation6_spill] sm:$0xff] }
 0x15f   :  { %v496_v52 = vcombine.low %v2267_v42, %v472_v35  ;;  %1340 = vmax.xlane.f32.xlu1 %v1339_v0  ;;  %v1330_v62 = vsel %vm1320_vm0, %v363_v51, -inf  ;;  %v365_v54 = vcombine.high %v2234_v56, %v2474_v2  ;;  %v3211_v8 = vcombine.high %v2190_v3, %v3210_v16  ;;  %v3216_v51 = vld [vmem:[#allocation7_spill] sm:$0xff]  ;;  %v3217_v16 = vld [vmem:[#allocation8_spill] sm:$0xff] }
 0x160   :  { %v3214_v60 = vcombine.high %v3212_v61, %v3213_v10  ;;  %v367_v25 = vcombine.high %v2260_v29, %v2487_v14  ;;  %v497_v56 = vcombine.high %v2267_v42, %v472_v35  ;;  %v3215_v3 = vcombine.high %v2205_v6, %v2322_v20  ;;  %v3221_v61 = vld [vmem:[#allocation9_spill] sm:$0xff] }
 0x161   :  { %v2611_v37 = vrot.slane %v3211_v8, %v2117_v9  ;;  %1331 = vmax.xlane.f32.xlu0 %v1330_v62  ;;  %v680_v45 = vrot.slane %v672_v43, %v2103_v63  ;;  %v498_v50 = vcombine.low %v3216_v51, %v479_v5  ;;  %v495_v0 = vrot.slane %v481_v11, %v2117_v9 }
 0x162   :  { %v2617_v30 = vrot.slane %v3214_v60, %v2117_v9  ;;  %v2627_v2 = vrot.slane %v3215_v3, %v2117_v9  ;;  %v499_v26 = vcombine.high %v3216_v51, %v479_v5  ;;  %v1345_v62 = vsel %vm1320_vm0, %v496_v52, -inf }
 0x163   :  { %v500_v29 = vcombine.low %v3217_v16, %v488_v19  ;;  %v608_v42 = vrot.slane %v600_v41, %v2117_v9  ;;  %v615_v14 = vrot.slane %v601_v49, %v2117_v9  ;;  %1346 = vmax.xlane.f32.xlu1 %v1345_v62  ;;  %v1336_v6 = vsel %vm1320_vm0, %v365_v54, -inf }
 0x164   :  { %v3218_v63 = vcombine.low %v2426_v32, %v2458_v31  ;;  %v3219_v35 = vcombine.high %v2426_v32, %v2458_v31  ;;  %v3220_v11 = vcombine.high %v2197_v4, %v2294_v36  ;;  %v736_v5 = vcombine.low %v680_v45, %v696_v57  ;;  %v3222_v36 = vld [vmem:[#allocation11_spill] sm:$0xff] }
 0x165   :  { %v737_v49 = vcombine.high %v680_v45, %v696_v57  ;;  %1337 = vmax.xlane.f32.xlu0 %v1336_v6  ;;  %v1342_v52 = vsel %vm1320_vm0, %v367_v25, -inf  ;;  %v1348_v54 = vsel %vm1320_vm0, %v497_v56, -inf  ;;  %v1351_v8 = vsel %vm1320_vm0, %v498_v50, -inf  ;;  %v3223_v56 = vld [vmem:[#allocation12_spill] sm:$0xff] }
 0x166   :  { %v2642_v20 = vrot.slane %v3218_v63, %v2117_v9  ;;  %v2648_v43 = vrot.slane %v3219_v35, %v2117_v9  ;;  %v2654_v41 = vrot.slane %v3220_v11, %v2117_v9  ;;  %v502_v10 = vcombine.low %v3221_v61, %v495_v0 }
 0x167   :  { %v501_v32 = vcombine.high %v3217_v16, %v488_v19  ;;  %v503_v31 = vcombine.high %v3221_v61, %v495_v0  ;;  %v1357_v60 = vsel %vm1320_vm0, %v500_v29, -inf  ;;  %v1354_v4 = vsel %vm1320_vm0, %v499_v26, -inf  ;;  %1352 = vmax.xlane.f32.xlu1 %v1351_v8 }
 0x168   :  { %v632_v3 = vcombine.low %v3222_v36, %v608_v42  ;;  %v634_v57 = vcombine.low %v2338_v39, %v615_v14  ;;  %v633_v25 = vcombine.high %v3222_v36, %v608_v42  ;;  %v636_v45 = vcombine.low %v3223_v56, %v2642_v20 }
 0x169   :  { %v635_v51 = vcombine.high %v2338_v39, %v615_v14  ;;  %v638_v19 = vcombine.low %v2344_v15, %v2648_v43  ;;  %1343 = vmax.xlane.f32.xlu0 %v1342_v52  ;;  %v3224_v50 = vcombine.low %v2439_v44, %v2522_v12  ;;  %v3225_v26 = vcombine.low %v2447_v21, %v2541_v13 }
 0x16a   :  { %v3226_v39 = vcombine.low %v2454_v33, %v2548_v18  ;;  %v751_v29 = vrot.slane %v737_v49, %v2117_v9  ;;  %v1363_v42 = vsel %vm1320_vm0, %v502_v10, -inf  ;;  %v1360_v14 = vsel %vm1320_vm0, %v501_v32, -inf }
 0x16b   :  { %v2676_v0 = vrot.slane %v3224_v50, %v2117_v9  ;;  %v2682_v62 = vrot.slane %v3225_v26, %v2117_v9  ;;  %v2694_v6 = vsel %vm1320_vm0, %v503_v31, -inf  ;;  %v2697_v63 = vrot.slane %v736_v5, %v2117_v9  ;;  %1358 = vmax.xlane.f32.xlu1 %v1357_v60 }
 0x16c   :  { %v2688_v16 = vrot.slane %v3226_v39, %v2117_v9  ;;  %v1369_v35 = vsel %vm1320_vm0, %v632_v3, -inf  ;;  %v1375_v8 = vsel %vm1320_vm0, %v634_v57, -inf  ;;  %v770_v10 = vcombine.low %v2381_v24, %v751_v29 }
 0x16d   :  { %v1177_v5 = vcombine.high %v2360_v59, %v2682_v62  ;;  %1349 = vmax.xlane.f32.xlu0 %v1348_v54  ;;  %v2713_v32 = vsel %vm1320_vm0, %v633_v25, -inf  ;;  %v2716_v31 = vsel %vm1320_vm0, %v636_v45, -inf  ;;  %v2719_v36 = vsel %vm1320_vm0, %v635_v51, -inf }
 0x16e   :  { %v2722_v60 = vsel %vm1320_vm0, %v638_v19, -inf  ;;  %v2730_v54 = vsel %vm1320_vm0, %v770_v10, -inf  ;;  %v1313_v25 = vcombine.high %v2363_v58, %v2688_v16  ;;  %v3227_v45 = vcombine.high %v2439_v44, %v2522_v12 }
 0x16f   :  { %v2727_v57 = vsel %vm1320_vm0, %v1177_v5, -inf  ;;  %v3228_v19 = vcombine.high %v2433_v55, %v2496_v48  ;;  %v3229_v26 = vcombine.high %v2454_v33, %v2548_v18  ;;  %v3230_v5 = vcombine.high %v2447_v21, %v2541_v13  ;;  %1364 = vmax.xlane.f32.xlu1 %v1363_v42  ;;  %v3234_v13 = vld [vmem:[#allocation14_spill] sm:$0xff] }
 0x170   :  { %v1023_v51 = vrot.slane %v3227_v45, %v2117_v9  ;;  %v2751_v49 = vsel %vm1320_vm0, %v1313_v25, -inf  ;;  %v771_v44 = vcombine.high %v2381_v24, %v751_v29  ;;  %v3231_v12 = vcombine.low %v2429_v46, %v2493_v1 }
 0x171   :  { %v887_v50 = vrot.slane %v3228_v19, %v2117_v9  ;;  %v1295_v39 = vrot.slane %v3229_v26, %v2117_v9  ;;  %v1159_v10 = vrot.slane %v3230_v5, %v2117_v9  ;;  %v3232_v33 = vcombine.low %v2444_v7, %v2525_v40  ;;  %1355 = vmax.xlane.f32.xlu0 %v1354_v4  ;;  %v3233_v19 = vld [vmem:[#allocation13_spill] sm:$0xff]  ;;  %v3235_v26 = vld [vmem:[#allocation15_spill] sm:$0xff]  ;;  %v3236_v5 = vld [vmem:[#allocation16_spill] sm:$0xff] }
 0x172   :  { %v760_v45 = vrot.slane %v3231_v12, %v2117_v9  ;;  %v1042_v21 = vcombine.low %v3233_v19, %v1023_v51  ;;  %v2768_v29 = vsel %vm1320_vm0, %v771_v44, -inf  ;;  %v1043_v52 = vcombine.high %v3233_v19, %v1023_v51  ;;  %v3241_v44 = vld [vmem:[#allocation17_spill] sm:$0xff] }
 0x173   :  { %v1032_v18 = vrot.slane %v3232_v33, %v2117_v9  ;;  %v906_v42 = vcombine.low %v3234_v13, %v887_v50  ;;  %v1314_v25 = vcombine.low %v3235_v26, %v1295_v39  ;;  %v1178_v61 = vcombine.low %v3236_v5, %v1159_v10  ;;  %3237 = vst [vmem:[#allocation10_spill] sm:$0xff] %v2768_v29  ;;  %v3249_v29 = vld [vmem:[#allocation20_spill] sm:$0xff] }
 0x174   :  { %v907_v24 = vcombine.high %v3234_v13, %v887_v50  ;;  %v1179_v12 = vcombine.high %v3236_v5, %v1159_v10  ;;  %v2773_v33 = vsel %vm1320_vm0, %v1042_v21, -inf  ;;  %1370 = vmax.xlane.f32.xlu1 %v1369_v35  ;;  %v2791_v51 = vsel %vm1320_vm0, %v1043_v52, -inf  ;;  %v3242_v13 = vld [vmem:[#allocation18_spill] sm:$0xff] }
 0x175   :  { %v2776_v4 = vsel %vm1320_vm0, %v906_v42, -inf  ;;  %v2779_v11 = vsel %vm1320_vm0, %v1314_v25, -inf  ;;  %v2782_v3 = vsel %vm1320_vm0, %v1178_v61, -inf  ;;  %3240 = vst [vmem:[#allocation7_spill] sm:$0xff] %v2791_v51  ;;  %v772_v19 = vcombine.low %v3241_v44, %v760_v45  ;;  %1361 = vmax.xlane.f32.xlu0 %v1360_v14  ;;  %v3243_v61 = vld [vmem:[#allocation22_spill] sm:$0xff]  ;;  %v3244_v25 = vld [vmem:[#allocation23_spill] sm:$0xff] }
 0x176   :  { %3238 = vst [vmem:[#allocation4_spill] sm:$0xff] %v2782_v3  ;;  %v2785_v50 = vsel %vm1320_vm0, %v907_v24, -inf  ;;  %v2788_v10 = vsel %vm1320_vm0, %v1179_v12, -inf  ;;  %v1315_v21 = vcombine.high %v3235_v26, %v1295_v39  ;;  %v1044_v42 = vcombine.low %v3242_v13, %v1032_v18  ;;  %v3248_v51 = vld [vmem:[#allocation19_spill] sm:$0xff] }
 0x177   :  { %3239 = vst [vmem:[#allocation6_spill] sm:$0xff] %v2788_v10  ;;  %v3245_v35 = vcombine.low %v3243_v61, %v3244_v25  ;;  %v1304_v24 = vrot.slane %v1296_v28, %v2117_v9  ;;  %v2805_v52 = vsel %vm1320_vm0, %v772_v19, -inf  ;;  %v3247_v14 = vcombine.low %v2451_v17, %v2544_v34 }
 0x178   :  { %3246 = vst [vmem:[#allocation8_spill] sm:$0xff] %v2805_v52  ;;  %v773_v26 = vcombine.high %v3241_v44, %v760_v45  ;;  %v1045_v12 = vcombine.high %v3242_v13, %v1032_v18  ;;  %v2814_v23 = vsel %vm1320_vm0, %v1315_v21, -inf  ;;  %1376 = vmax.xlane.f32.xlu1 %v1375_v8  ;;  %v3250_v52 = vld [vmem:[#allocation21_spill] sm:$0xff]  ;;  %v3251_v8 = vcombine.high %v2429_v46, %v2493_v1 }
 0x179   :  { %v896_v5 = vrot.slane %v3245_v35, %v2117_v9  ;;  %v1168_v39 = vrot.slane %v3247_v14, %v2117_v9  ;;  %v2817_v35 = vsel %vm1320_vm0, %v1044_v42, -inf  ;;  %v1316_v19 = vcombine.low %v3249_v29, %v1304_v24  ;;  %1367 = vmax.xlane.f32.xlu0 %v2694_v6 }
 0x17a   :  { %v2824_v14 = vsel %vm1320_vm0, %v773_v26, -inf  ;;  %v2835_v21 = vsel %vm1320_vm0, %v1045_v12, -inf  ;;  %v3253_v46 = vcombine.high %v3243_v61, %v3244_v25 }
 0x17b   :  { %v908_v28 = vcombine.low %v3248_v51, %v896_v5  ;;  %v1180_v10 = vcombine.low %v3250_v52, %v1168_v39  ;;  %v909_v3 = vcombine.high %v3248_v51, %v896_v5  ;;  %v1181_v45 = vcombine.high %v3250_v52, %v1168_v39 }
 0x17c   :  { %v2832_v44 = vsel %vm1320_vm0, %v1316_v19, -inf  ;;  %v767_v51 = vrot.slane %v3251_v8, %v2117_v9  ;;  %v1317_v5 = vcombine.high %v3249_v29, %v1304_v24  ;;  %v3252_v39 = vcombine.high %v2444_v7, %v2525_v40  ;;  %1382 = vmax.xlane.f32.xlu1 %v2716_v31 }
 0x17d   :  { %v2829_v18 = vsel %vm1320_vm0, %v908_v28, -inf  ;;  %v2842_v13 = vsel %vm1320_vm0, %v1180_v10, -inf  ;;  %v2845_v42 = vsel %vm1320_vm0, %v909_v3, -inf  ;;  %v2848_v6 = vsel %vm1320_vm0, %v1181_v45, -inf  ;;  %1373 = vmax.xlane.f32.xlu0 %v2713_v32 }
 0x17e   :  { %v774_v52 = vcombine.low %v2592_v27, %v767_v51  ;;  %v1039_v26 = vrot.slane %v3252_v39, %v2117_v9  ;;  %v903_v1 = vrot.slane %v3253_v46, %v2117_v9  ;;  %v3254_v3 = vcombine.high %v2468_v22, %v2567_v53 }
 0x17f   :  { %v3255_v29 = vcombine.low %v2433_v55, %v2496_v48  ;;  %v2870_v7 = vsel %vm1320_vm0, %v1317_v5, -inf  ;;  %v3256_v40 = vcombine.high %v2451_v17, %v2544_v34  ;;  %v775_v25 = vcombine.high %v2592_v27, %v767_v51  ;;  %v3258_v5 = vld [vmem:[#allocation5_spill] sm:$0xff] }
 0x180   :  { %v1311_v10 = vrot.slane %v3254_v3, %v2117_v9  ;;  %v2879_v22 = vsel %vm1320_vm0, %v774_v52, -inf  ;;  %v1046_v53 = vcombine.low %v2611_v37, %v1039_v26  ;;  %v910_v55 = vcombine.low %v2617_v30, %v903_v1  ;;  %1388 = vmax.xlane.f32.xlu1 %v2722_v60 }
 0x181   :  { %v880_v24 = vrot.slane %v3255_v29, %v2117_v9  ;;  %v1175_v61 = vrot.slane %v3256_v40, %v2117_v9  ;;  %v911_v12 = vcombine.high %v2617_v30, %v903_v1  ;;  %v2887_v17 = vsel %vm1320_vm0, %v775_v25, -inf  ;;  %1379 = vmax.xlane.f32.xlu0 %v2719_v36 }
 0x182   :  { %v1318_v48 = vcombine.low %v2627_v2, %v1311_v10  ;;  %v1459_v27 = vsel %vm1320_vm0, %v1046_v53, -inf  ;;  %v1435_v32 = vsel %vm1320_vm0, %v910_v55, -inf  ;;  %v1047_v19 = vcombine.high %v2611_v37, %v1039_v26 }
 0x183   :  { %v1182_v31 = vcombine.low %v2654_v41, %v1175_v61  ;;  %v1183_v34 = vcombine.high %v2654_v41, %v1175_v61  ;;  %v1438_v8 = vsel %vm1320_vm0, %v911_v12, -inf  ;;  %v1319_v51 = vcombine.high %v2627_v2, %v1311_v10  ;;  %v3257_v41 = vld [vmem:[#allocation3_spill] sm:$0xff] }
 0x184   :  { %v1507_v28 = vsel %vm1320_vm0, %v1318_v48, -inf  ;;  %v3259_v52 = vcombine.low %v3257_v41, %v3258_v5  ;;  %v1462_v46 = vsel %vm1320_vm0, %v1047_v19, -inf  ;;  %v3260_v60 = vcombine.low %v2357_v38, %v2697_v63 }
 0x185   :  { %v1483_v45 = vsel %vm1320_vm0, %v1182_v31, -inf  ;;  %v1486_v30 = vsel %vm1320_vm0, %v1183_v34, -inf  ;;  %v1510_v37 = vsel %vm1320_vm0, %v1319_v51, -inf  ;;  %v3261_v2 = vcombine.high %v3223_v56, %v2642_v20 }
 0x186   :  { %v848_v39 = vrot.slane %v3259_v52, %v2117_v9  ;;  %v1393_v26 = vsel %vm1320_vm0, %v3260_v60, -inf  ;;  %v639_v3 = vcombine.high %v2344_v15, %v2648_v43  ;;  %v769_v29 = vcombine.high %v2357_v38, %v2697_v63 }
 0x187   :  { %v1384_v36 = vsel %vm1320_vm0, %v3261_v2, -inf  ;;  %1394 = vmax.xlane.f32.xlu1 %v1393_v26  ;;  %v3262_v40 = vcombine.low %v2354_v47, %v2676_v0  ;;  %v1176_v56 = vcombine.low %v2360_v59, %v2682_v62  ;;  %v3263_v38 = vcombine.low %v2363_v58, %v2688_v16  ;;  %v3265_v58 = vld [vmem:[#allocation4_spill] sm:$0xff]  ;;  %v3269_v16 = vld [vmem:[#allocation7_spill] sm:$0xff] }
 0x188   :  { %v904_v1 = vcombine.low %v848_v39, %v880_v24  ;;  %1385 = vmax.xlane.f32.xlu0 %v1384_v36  ;;  %v1390_v10 = vsel %vm1320_vm0, %v639_v3, -inf  ;;  %v1396_v15 = vsel %vm1320_vm0, %v769_v29, -inf  ;;  %v905_v43 = vcombine.high %v848_v39, %v880_v24  ;;  %v3268_v62 = vld [vmem:[#allocation8_spill] sm:$0xff] }
 0x189   :  { %v1441_v20 = vsel %vm1320_vm0, %v3262_v40, -inf  ;;  %v1465_v61 = vsel %vm1320_vm0, %v1176_v56, -inf  ;;  %v1489_v63 = vsel %vm1320_vm0, %v3263_v38, -inf  ;;  %v3264_v53 = vcombine.high %v2354_v47, %v2676_v0  ;;  %v3266_v47 = vld [vmem:[#allocation6_spill] sm:$0xff] }
 0x18a   :  { %v1417_v9 = vsel %vm1320_vm0, %v904_v1, -inf  ;;  %v1420_v25 = vsel %vm1320_vm0, %v905_v43, -inf  ;;  %v3267_v0 = vld [vmem:[#allocation10_spill] sm:$0xff] }
 0x18b   :  { %1418 = vmax.xlane.f32.xlu1 %v1417_v9  ;;  %v1444_v59 = vsel %vm1320_vm0, %v3264_v53, -inf }
 0x18c   :  { %1391 = vmax.xlane.f32.xlu0 %v1390_v10 }
 0x18f   :  { %1442 = vmax.xlane.f32.xlu1 %v1441_v20 }
 0x190   :  { %1397 = vmax.xlane.f32.xlu0 %v1396_v15 }
 0x193   :  { %1466 = vmax.xlane.f32.xlu1 %v1465_v61 }
 0x194   :  { %1421 = vmax.xlane.f32.xlu0 %v1420_v25 }
 0x197   :  { %1490 = vmax.xlane.f32.xlu1 %v1489_v63 }
 0x198   :  { %1445 = vmax.xlane.f32.xlu0 %v1444_v59 }
 0x19b   :  { %1400 = vmax.xlane.f32.xlu1 %v2730_v54  ;;  %v3271_v54 = vld [vmem:[#allocation2_spill] sm:$0xff] }
 0x19c   :  { %1469 = vmax.xlane.f32.xlu0 %v2727_v57 }
 0x19f   :  { %1448 = vmax.xlane.f32.xlu1 %v2773_v33 }
 0x1a0   :  { %1493 = vmax.xlane.f32.xlu0 %v2751_v49 }
 0x1a3   :  { %1496 = vmax.xlane.f32.xlu1 %v2779_v11 }
 0x1a4   :  { %1424 = vmax.xlane.f32.xlu0 %v2776_v4 }
 0x1a7   :  { %1427 = vmax.xlane.f32.xlu1 %v2785_v50 }
 0x1a8   :  { %1472 = vmax.xlane.f32.xlu0 %v3265_v58 }
 0x1ab   :  { %1475 = vmax.xlane.f32.xlu1 %v3266_v47 }
 0x1ac   :  { %1403 = vmax.xlane.f32.xlu0 %v3267_v0 }
 0x1af   :  { %1406 = vmax.xlane.f32.xlu1 %v3268_v62 }
 0x1b0   :  { %1451 = vmax.xlane.f32.xlu0 %v3269_v16 }
 0x1b3   :  { %1454 = vmax.xlane.f32.xlu1 %v2817_v35 }
 0x1b4   :  { %1499 = vmax.xlane.f32.xlu0 %v2814_v23  ;;  %v3270_v23 = vlaneseq }
 0x1b6   :  { %v1578_v11 = vand.u32 127, %v3270_v23 }
 0x1b7   :  { %1502 = vmax.xlane.f32.xlu1 %v2832_v44 }
 0x1b8   :  { %1430 = vmax.xlane.f32.xlu0 %v2829_v18  ;;  %v2963_v33 = vsub.s32 %v1578_v11, %v3271_v54 }
 0x1bb   :  { %1433 = vmax.xlane.f32.xlu1 %v2845_v42 }
 0x1bc   :  { %1478 = vmax.xlane.f32.xlu0 %v2842_v13 }
 0x1bf   :  { %1481 = vmax.xlane.f32.xlu1 %v2848_v6 }
 0x1c0   :  { %1409 = vmax.xlane.f32.xlu0 %v2824_v14 }
 0x1c3   :  { %1412 = vmax.xlane.f32.xlu1 %v2879_v22 }
 0x1c4   :  { %1457 = vmax.xlane.f32.xlu0 %v2835_v21 }
 0x1c7   :  { %1460 = vmax.xlane.f32.xlu1 %v1459_v27 }
 0x1c8   :  { %1505 = vmax.xlane.f32.xlu0 %v2870_v7 }
 0x1cb   :  { %1508 = vmax.xlane.f32.xlu1 %v1507_v28 }
 0x1cc   :  { %1436 = vmax.xlane.f32.xlu0 %v1435_v32 }
 0x1cf   :  { %1439 = vmax.xlane.f32.xlu1 %v1438_v8 }
 0x1d0   :  { %1484 = vmax.xlane.f32.xlu0 %v1483_v45 }
 0x1d3   :  { %1487 = vmax.xlane.f32.xlu1 %v1486_v30 }
 0x1d4   :  { %1415 = vmax.xlane.f32.xlu0 %v2887_v17 }
 0x1d8   :  { %1463 = vmax.xlane.f32.xlu0 %v1462_v46 }
 0x1dc   :  { %1511 = vmax.xlane.f32.xlu0 %v1510_v37 }
 0x1e3   :  { %v1326_v49 = vpop.xlane.xlu1 %1325  ;;  %v1323_v57 = vpop.xlane.xlu0 %1322 }
 0x1e4   :  { %v1586_v35 = vrot.slane %v1326_v49, %v2963_v33  ;;  %v1582_v14 = vrot.slane %v1323_v57, %v2963_v33 }
 0x1e6   :  { %v1836_v13 = vsel %vm1835_vm1, %v1586_v35, %v1582_v14 }
 0x1e7   :  { %v1335_v4 = vpop.xlane.xlu1 %1334 }
 0x1e8   :  { %v1598_v22 = vrot.slane %v1335_v4, %v2963_v33 }
 0x1ea   :  { %v1329_v50 = vpop.xlane.xlu0 %1328 }
 0x1eb   :  { %v1590_v18 = vrot.slane %v1329_v50, %v2963_v33 }
 0x1ec   :  { %v1341_v44 = vpop.xlane.xlu1 %1340 }
 0x1ed   :  { %v1838_v6 = vsel %vm1837_vm2, %v1590_v18, %v1836_v13  ;;  %v1606_v34 = vrot.slane %v1341_v44, %v2963_v33 }
 0x1ee   :  { %v1332_v21 = vpop.xlane.xlu0 %1331 }
 0x1ef   :  { %v1594_v42 = vrot.slane %v1332_v21, %v2963_v33 }
 0x1f0   :  { %v1347_v7 = vpop.xlane.xlu1 %1346 }
 0x1f1   :  { %v1840_v24 = vsel %vm1839_vm3, %v1594_v42, %v1838_v6  ;;  %v1614_v30 = vrot.slane %v1347_v7, %v2963_v33 }
 0x1f2   :  { %v1338_v55 = vpop.xlane.xlu0 %1337  ;;  %v1842_v31 = vsel %vm1841_vm4, %v1598_v22, %v1840_v24 }
 0x1f3   :  { %v1602_v48 = vrot.slane %v1338_v55, %v2963_v33 }
 0x1f4   :  { %v1353_v17 = vpop.xlane.xlu1 %1352 }
 0x1f5   :  { %v1844_v12 = vsel %vm1843_vm5, %v1602_v48, %v1842_v31  ;;  %v1622_v52 = vrot.slane %v1353_v17, %v2963_v33 }
 0x1f6   :  { %v1344_v27 = vpop.xlane.xlu0 %1343  ;;  %v1846_v28 = vsel %vm1845_vm6, %v1606_v34, %v1844_v12 }
 0x1f7   :  { %v1610_v32 = vrot.slane %v1344_v27, %v2963_v33 }
 0x1f8   :  { %v1359_v45 = vpop.xlane.xlu1 %1358 }
 0x1f9   :  { %v1848_v19 = vsel %vm1847_vm7, %v1610_v32, %v1846_v28  ;;  %v1630_v1 = vrot.slane %v1359_v45, %v2963_v33 }
 0x1fa   :  { %1907 = vst.msk [vmem:[%s3160_s1] sm:$0xff] %vm1906_vm8, %v1848_v19  ;;  %v1350_v8 = vpop.xlane.xlu0 %1349 }
 0x1fb   :  { %v1618_v51 = vrot.slane %v1350_v8, %v2963_v33 }
 0x1fc   :  { %v1365_v5 = vpop.xlane.xlu1 %1364 }
 0x1fd   :  { %v1849_v41 = vsel %vm1835_vm1, %v1618_v51, %v1614_v30  ;;  %v1638_v29 = vrot.slane %v1365_v5, %v2963_v33 }
 0x1fe   :  { %v1356_v39 = vpop.xlane.xlu0 %1355  ;;  %v1850_v37 = vsel %vm1837_vm2, %v1622_v52, %v1849_v41 }
 0x1ff   :  { %v1626_v46 = vrot.slane %v1356_v39, %v2963_v33 }
 0x201   :  { %v1851_v60 = vsel %vm1839_vm3, %v1626_v46, %v1850_v37  ;;  %v1371_v26 = vpop.xlane.xlu1 %1370 }
 0x202   :  { %v1362_v2 = vpop.xlane.xlu0 %1361  ;;  %v1852_v3 = vsel %vm1841_vm4, %v1630_v1, %v1851_v60  ;;  %v1646_v25 = vrot.slane %v1371_v26, %v2963_v33 }
 0x203   :  { %v1634_v36 = vrot.slane %v1362_v2, %v2963_v33 }
 0x205   :  { %v1853_v9 = vsel %vm1843_vm5, %v1634_v36, %v1852_v3  ;;  %v1377_v10 = vpop.xlane.xlu1 %1376 }
 0x206   :  { %v1368_v40 = vpop.xlane.xlu0 %1367  ;;  %v1854_v56 = vsel %vm1845_vm6, %v1638_v29, %v1853_v9  ;;  %v1654_v59 = vrot.slane %v1377_v10, %v2963_v33 }
 0x207   :  { %v1642_v20 = vrot.slane %v1368_v40, %v2963_v33 }
 0x209   :  { %v1855_v15 = vsel %vm1847_vm7, %v1642_v20, %v1854_v56  ;;  %v1383_v43 = vpop.xlane.xlu1 %1382 }
 0x20a   :  { %1908 = vst.msk [vmem:[%s3160_s1 + $0x8] sm:$0xff] %vm1906_vm8, %v1855_v15  ;;  %v1374_v61 = vpop.xlane.xlu0 %1373  ;;  %v1662_v23 = vrot.slane %v1383_v43, %v2963_v33 }
 0x20b   :  { %v1650_v38 = vrot.slane %v1374_v61, %v2963_v33 }
 0x20d   :  { %v1856_v63 = vsel %vm1835_vm1, %v1650_v38, %v1646_v25  ;;  %v1389_v53 = vpop.xlane.xlu1 %1388 }
 0x20e   :  { %v1380_v58 = vpop.xlane.xlu0 %1379  ;;  %v1857_v0 = vsel %vm1837_vm2, %v1654_v59, %v1856_v63  ;;  %v1670_v50 = vrot.slane %v1389_v53, %v2963_v33 }
 0x20f   :  { %v1658_v47 = vrot.slane %v1380_v58, %v2963_v33 }
 0x211   :  { %v1858_v62 = vsel %vm1839_vm3, %v1658_v47, %v1857_v0 }
 0x212   :  { %v1859_v57 = vsel %vm1841_vm4, %v1662_v23, %v1858_v62 }
 0x214   :  { %v1395_v16 = vpop.xlane.xlu1 %1394 }
 0x215   :  { %v1386_v11 = vpop.xlane.xlu0 %1385  ;;  %v1678_v3 = vrot.slane %v1395_v16, %v2963_v33 }
 0x216   :  { %v1666_v49 = vrot.slane %v1386_v11, %v2963_v33 }
 0x218   :  { %v1860_v54 = vsel %vm1843_vm5, %v1666_v49, %v1859_v57  ;;  %v1419_v4 = vpop.xlane.xlu1 %1418 }
 0x219   :  { %v1392_v35 = vpop.xlane.xlu0 %1391  ;;  %v1861_v18 = vsel %vm1845_vm6, %v1670_v50, %v1860_v54  ;;  %v1710_v29 = vrot.slane %v1419_v4, %v2963_v33 }
 0x21a   :  { %v1674_v14 = vrot.slane %v1392_v35, %v2963_v33 }
 0x21c   :  { %v1862_v44 = vsel %vm1847_vm7, %v1674_v14, %v1861_v18  ;;  %v1443_v21 = vpop.xlane.xlu1 %1442 }
 0x21d   :  { %1909 = vst.msk [vmem:[%s3160_s1 + $0x10] sm:$0xff] %vm1906_vm8, %v1862_v44  ;;  %v1398_v13 = vpop.xlane.xlu0 %1397  ;;  %v1742_v15 = vrot.slane %v1443_v21, %v2963_v33 }
 0x21e   :  { %v1682_v1 = vrot.slane %v1398_v13, %v2963_v33 }
 0x220   :  { %v1467_v42 = vpop.xlane.xlu1 %1466  ;;  %v1863_v25 = vsel %vm1835_vm1, %v1682_v1, %v1678_v3 }
 0x221   :  { %v1422_v6 = vpop.xlane.xlu0 %1421  ;;  %v1774_v38 = vrot.slane %v1467_v42, %v2963_v33 }
 0x222   :  { %v1714_v2 = vrot.slane %v1422_v6, %v2963_v33 }
 0x224   :  { %v3022_v24 = vpop.xlane.xlu1 %1490  ;;  %v1870_v63 = vsel %vm1835_vm1, %v1714_v2, %v1710_v29 }
 0x225   :  { %v1446_v7 = vpop.xlane.xlu0 %1445  ;;  %v1806_v29 = vrot.slane %v3022_v24, %v2963_v33 }
 0x226   :  { %v1746_v9 = vrot.slane %v1446_v7, %v2963_v33 }
 0x228   :  { %v1401_v22 = vpop.xlane.xlu1 %1400  ;;  %v1877_v58 = vsel %vm1835_vm1, %v1746_v9, %v1742_v15 }
 0x229   :  { %v1470_v55 = vpop.xlane.xlu0 %1469  ;;  %v1686_v40 = vrot.slane %v1401_v22, %v2963_v33 }
 0x22a   :  { %v1778_v20 = vrot.slane %v1470_v55, %v2963_v33 }
 0x22b   :  { %v1864_v16 = vsel %vm1837_vm2, %v1686_v40, %v1863_v25 }
 0x22c   :  { %v3024_v48 = vpop.xlane.xlu1 %1448  ;;  %v1884_v23 = vsel %vm1835_vm1, %v1778_v20, %v1774_v38 }
 0x22d   :  { %v3026_v31 = vpop.xlane.xlu0 %1493  ;;  %v1750_v57 = vrot.slane %v3024_v48, %v2963_v33 }
 0x22e   :  { %v1810_v55 = vrot.slane %v3026_v31, %v2963_v33 }
 0x230   :  { %v3028_v12 = vpop.xlane.xlu1 %1496 }
 0x231   :  { %v1425_v17 = vpop.xlane.xlu0 %1424  ;;  %v1814_v3 = vrot.slane %v3028_v12, %v2963_v33 }
 0x232   :  { %v1718_v10 = vrot.slane %v1425_v17, %v2963_v33 }
 0x234   :  { %v1428_v34 = vpop.xlane.xlu1 %1427  ;;  %v1871_v47 = vsel %vm1837_vm2, %v1718_v10, %v1870_v63 }
 0x235   :  { %v1473_v27 = vpop.xlane.xlu0 %1472  ;;  %v1722_v56 = vrot.slane %v1428_v34, %v2963_v33 }
 0x236   :  { %v1782_v0 = vrot.slane %v1473_v27, %v2963_v33  ;;  %v1878_v27 = vsel %vm1837_vm2, %v1750_v57, %v1877_v58 }
 0x237   :  { %v1872_v11 = vsel %vm1839_vm3, %v1722_v56, %v1871_v47 }
 0x238   :  { %v1476_v32 = vpop.xlane.xlu1 %1475  ;;  %v1885_v42 = vsel %vm1837_vm2, %v1782_v0, %v1884_v23 }
 0x239   :  { %v1404_v28 = vpop.xlane.xlu0 %1403  ;;  %v1786_v49 = vrot.slane %v1476_v32, %v2963_v33 }
 0x23a   :  { %v1690_v54 = vrot.slane %v1404_v28, %v2963_v33 }
 0x23b   :  { %v1886_v48 = vsel %vm1839_vm3, %v1786_v49, %v1885_v42 }
 0x23c   :  { %v3030_v19 = vpop.xlane.xlu1 %1406  ;;  %v1865_v32 = vsel %vm1839_vm3, %v1690_v54, %v1864_v16 }
 0x23d   :  { %v3032_v45 = vpop.xlane.xlu0 %1451  ;;  %v1694_v14 = vrot.slane %v3030_v19, %v2963_v33 }
 0x23e   :  { %v1754_v28 = vrot.slane %v3032_v45, %v2963_v33 }
 0x240   :  { %v3034_v8 = vpop.xlane.xlu1 %1454  ;;  %v1879_v40 = vsel %vm1839_vm3, %v1754_v28, %v1878_v27 }
 0x241   :  { %v3036_v30 = vpop.xlane.xlu0 %1499 }
 0x244   :  { %v3038_v51 = vpop.xlane.xlu1 %1502 }
 0x245   :  { %v1431_v41 = vpop.xlane.xlu0 %1430 }
 0x246   :  { %v1726_v43 = vrot.slane %v1431_v41, %v2963_v33  ;;  %v1866_v41 = vsel %vm1841_vm4, %v1694_v14, %v1865_v32 }
 0x248   :  { %v1434_v5 = vpop.xlane.xlu1 %1433  ;;  %v1873_v4 = vsel %vm1841_vm4, %v1726_v43, %v1872_v11 }
 0x249   :  { %v1479_v52 = vpop.xlane.xlu0 %1478  ;;  %v1730_v53 = vrot.slane %v1434_v5, %v2963_v33  ;;  %v1758_v5 = vrot.slane %v3034_v8, %v2963_v33 }
 0x24a   :  { %v1790_v50 = vrot.slane %v1479_v52, %v2963_v33 }
 0x24b   :  { %v1874_v18 = vsel %vm1843_vm5, %v1730_v53, %v1873_v4  ;;  %v1880_v20 = vsel %vm1841_vm4, %v1758_v5, %v1879_v40 }
 0x24c   :  { %v1482_v39 = vpop.xlane.xlu1 %1481  ;;  %v1887_v19 = vsel %vm1841_vm4, %v1790_v50, %v1886_v48 }
 0x24d   :  { %v1410_v46 = vpop.xlane.xlu0 %1409  ;;  %v1794_v44 = vrot.slane %v1482_v39, %v2963_v33 }
 0x24e   :  { %v1698_v6 = vrot.slane %v1410_v46, %v2963_v33 }
 0x24f   :  { %v1888_v52 = vsel %vm1843_vm5, %v1794_v44, %v1887_v19 }
 0x250   :  { %v3040_v37 = vpop.xlane.xlu1 %1412  ;;  %v1867_v45 = vsel %vm1843_vm5, %v1698_v6, %v1866_v41 }
 0x251   :  { %v3042_v60 = vpop.xlane.xlu0 %1457  ;;  %v1702_v17 = vrot.slane %v3040_v37, %v2963_v33 }
 0x252   :  { %v1762_v37 = vrot.slane %v3042_v60, %v2963_v33  ;;  %v1818_v60 = vrot.slane %v3036_v30, %v2963_v33  ;;  %v1891_v30 = vsel %vm1835_vm1, %v1810_v55, %v1806_v29 }
 0x253   :  { %v1868_v9 = vsel %vm1845_vm6, %v1702_v17, %v1867_v45  ;;  %v1892_v25 = vsel %vm1837_vm2, %v1814_v3, %v1891_v30 }
 0x254   :  { %v3044_v26 = vpop.xlane.xlu1 %1460  ;;  %v1881_v56 = vsel %vm1843_vm5, %v1762_v37, %v1880_v20  ;;  %v1893_v63 = vsel %vm1839_vm3, %v1818_v60, %v1892_v25 }
 0x255   :  { %v3048_v36 = vpop.xlane.xlu0 %1505  ;;  %v1766_v8 = vrot.slane %v3044_v26, %v2963_v33  ;;  %v1822_v26 = vrot.slane %v3038_v51, %v2963_v33 }
 0x256   :  { %v1826_v15 = vrot.slane %v3048_v36, %v2963_v33 }
 0x257   :  { %v1882_v38 = vsel %vm1845_vm6, %v1766_v8, %v1881_v56 }
 0x258   :  { %v3059_v61 = vpop.xlane.xlu1 %1508 }
 0x259   :  { %v1437_v59 = vpop.xlane.xlu0 %1436  ;;  %v1830_v51 = vrot.slane %v3059_v61, %v2963_v33 }
 0x25a   :  { %v1734_v62 = vrot.slane %v1437_v59, %v2963_v33  ;;  %v1894_v59 = vsel %vm1841_vm4, %v1822_v26, %v1893_v63 }
 0x25b   :  { %v1895_v58 = vsel %vm1843_vm5, %v1826_v15, %v1894_v59 }
 0x25c   :  { %v1440_v35 = vpop.xlane.xlu1 %1439  ;;  %v1875_v7 = vsel %vm1845_vm6, %v1734_v62, %v1874_v18  ;;  %v1896_v0 = vsel %vm1845_vm6, %v1830_v51, %v1895_v58 }
 0x25d   :  { %v1738_v21 = vrot.slane %v1440_v35, %v2963_v33  ;;  %v1485_v13 = vpop.xlane.xlu0 %1484 }
 0x25e   :  { %v1798_v22 = vrot.slane %v1485_v13, %v2963_v33 }
 0x25f   :  { %v1876_v34 = vsel %vm1847_vm7, %v1738_v21, %v1875_v7 }
 0x260   :  { %1911 = vst.msk [vmem:[%s3160_s1 + $0x20] sm:$0xff] %vm1906_vm8, %v1876_v34  ;;  %v1488_v31 = vpop.xlane.xlu1 %1487  ;;  %v1889_v1 = vsel %vm1845_vm6, %v1798_v22, %v1888_v52 }
 0x261   :  { %v1802_v39 = vrot.slane %v1488_v31, %v2963_v33  ;;  %v1416_v46 = vpop.xlane.xlu0 %1415 }
 0x262   :  { %v1706_v2 = vrot.slane %v1416_v46, %v2963_v33 }
 0x263   :  { %v1890_v10 = vsel %vm1847_vm7, %v1802_v39, %v1889_v1 }
 0x264   :  { %1913 = vst.msk [vmem:[%s3160_s1 + $0x30] sm:$0xff] %vm1906_vm8, %v1890_v10  ;;  %v1869_v12 = vsel %vm1847_vm7, %v1706_v2, %v1868_v9 }
 0x265   :  { %1910 = vst.msk [vmem:[%s3160_s1 + $0x18] sm:$0xff] %vm1906_vm8, %v1869_v12  ;;  %v1464_v24 = vpop.xlane.xlu0 %1463 }
 0x266   :  { %v1770_v43 = vrot.slane %v1464_v24, %v2963_v33 }
 0x268   :  { %v1883_v53 = vsel %vm1847_vm7, %v1770_v43, %v1882_v38 }
 0x269   :  { %1912 = vst.msk [vmem:[%s3160_s1 + $0x28] sm:$0xff] %vm1906_vm8, %v1883_v53  ;;  %v1512_v36 = vpop.xlane.xlu0 %1511 }
 0x26a   :  { %v1834_v47 = vrot.slane %v1512_v36, %v2963_v33 }
 0x26c   :  { %v1897_v61 = vsel %vm1847_vm7, %v1834_v47, %v1896_v0 }
 0x26d   :  { %1914 = vst.msk [vmem:[%s3160_s1 + $0x38] sm:$0xff] %vm1906_vm8, %v1897_v61 }

</bundles_post_ra>
